<compile_context>
chip_gen: v7x
topology: tpu7x:2x2x1
jax: 0.10.0
libtpu: 0.0.40
codegen_flags: <defaults>
</compile_context>

<pallas_src>
import jax
import jax.numpy as jnp
from jax import lax
from jax.experimental import pallas as pl
from jax.experimental.pallas import tpu as pltpu


_LENGTHSCALE = 0.35  # RBF lengthscale of the FNP cross-attention (normalized coords)


# -----------------------------------------------------------------------------
# Fused Pallas kernel: g_a -> FNP correction -> g_s  (BB batch elements / step)
# -----------------------------------------------------------------------------
def _latent_fnp_kernel(patches_ref, obs_ref, gaug_ref,
                       wga_ref, we1_ref, we2_ref, wd1_ref, wd2_ref, wgs_ref,
                       bias_ref, o_ref):
    """One grid step = BB batch elements.

    patches_ref: (BB*G, D)  bf16  patch features (batch folded into MXU M dim)
    obs_ref:     (BB, N, F) f32   obs features [coor(2), |coor|^2, 1, val(C)]
    gaug_ref:    (G, F)     f32   [gy/ls^2, gx/ls^2, -1/(2ls^2), -|g|^2/(2ls^2), 0..]
    w*_ref:      bf16 weights (MXU operands); bias_ref: (6, 128) f32 packed biases
    o_ref:       (BB*G, D)  f32   decoded patch pixels
    """
    BB, N, F = obs_ref.shape
    M, D = patches_ref.shape          # M = BB * G
    G = M // BB
    L = wga_ref.shape[1]
    Hd = we1_ref.shape[1]

    bias = bias_ref[...]              # (6, 128) f32, zero-padded rows
    b_ga = bias[0:1, :L]
    be1 = bias[1:2, :Hd]
    be2 = bias[2:3, :L]
    bd1 = bias[3:4, :Hd]
    bd2 = bias[4:5, :L]
    b_gs = bias[5:6, :D]

    # --- g_a: mean half of the moments == DiagonalGaussian.mode() -----------
    lat = jnp.dot(patches_ref[...], wga_ref[...],
                  preferred_element_type=jnp.float32) + b_ga           # (M, L) f32

    # --- FNP observation encoder MLP (batch folded into M) -------------------
    obs = obs_ref[...]                                                 # (BB, N, F) f32
    obs_flat = obs.reshape(BB * N, F)
    h1 = jnp.maximum(
        jnp.dot(obs_flat.astype(jnp.bfloat16), we1_ref[...],
                preferred_element_type=jnp.float32) + be1, 0.0)        # (BB*N, Hd)
    r = (jnp.dot(h1.astype(jnp.bfloat16), we2_ref[...],
                 preferred_element_type=jnp.float32) + be2)            # (BB*N, L)
    r3 = r.reshape(BB, N, L)

    # --- RBF cross-attention as a single matmul ------------------------------
    # logits[b*N+n, g] = obs[b,n] . gaug[g] = -||grid_g - coor_bn||^2/(2 ls^2) <= 0
    # (the ones / -|g|^2 columns make this exact -> no row-max subtraction; kept
    #  in f32 so the <= 0 bound and the distances stay accurate)
    logits = lax.dot_general(obs_flat, gaug_ref[...], (((1,), (1,)), ((), ())),
                             preferred_element_type=jnp.float32)       # (BB*N, G)
    w = jnp.exp(logits).reshape(BB, N, G)                              # <= 1
    wts = w * pl.reciprocal(jnp.sum(w, axis=1, keepdims=True), approx=True)
    agg = lax.dot_general(wts.astype(jnp.bfloat16), r3.astype(jnp.bfloat16),
                          (((1,), (1,)), ((0,), (0,))),
                          preferred_element_type=jnp.float32)          # (BB, G, L)
    agg = agg.reshape(M, L)

    # --- FNP decoder MLP: single fused dot over [lat, agg], residual update ---
    la = jnp.concatenate([lat, agg], axis=-1).astype(jnp.bfloat16)     # (M, 2L)
    h2 = jnp.maximum(
        jnp.dot(la, wd1_ref[...], preferred_element_type=jnp.float32) + bd1,
        0.0)                                                           # (M, Hd)
    ana = lat + jnp.dot(h2.astype(jnp.bfloat16), wd2_ref[...],
                        preferred_element_type=jnp.float32) + bd2      # (M, L)

    # --- g_s: decode latent back to patch pixels ((C, Ph, Pw) feature order) --
    o_ref[...] = (jnp.dot(ana.astype(jnp.bfloat16), wgs_ref[...],
                          preferred_element_type=jnp.float32) + b_gs)  # (M, D)


# -----------------------------------------------------------------------------
# Model wrapper (parameter setup + tiny reshape glue in plain JAX)
# -----------------------------------------------------------------------------
class LatentFNPPallas:
    def __init__(self, key, *, in_ch=4, H=16, W=16, patch=4, latent_ch=8,
                 n_obs=8, hidden=32, batch_block=2):
        self.in_ch, self.H, self.W = in_ch, H, W
        self.P, self.L = patch, latent_ch
        self.h, self.w = H // patch, W // patch
        self.G = self.h * self.w
        self.hidden = hidden
        self.n_obs = n_obs
        self.batch_block = batch_block
        self.sample_posterior = False            # matches the reference module

        patch_dim = in_ch * patch * patch
        self.patch_dim = patch_dim
        assert patch_dim <= 128 and hidden <= 128 and latent_ch <= 128
        ks = jax.random.split(key, 8)

        def init(k, shape, fan_in):
            return (jax.random.normal(k, shape, jnp.float32)
                    / jnp.sqrt(fan_in)).astype(jnp.float32)

        # g_a produces 2L moment channels (mean, logvar); mode() == mean.  With
        # sample_posterior=False the logvar half is dead -> slice it away.
        W_ga_full = init(ks[0], (patch_dim, 2 * latent_ch), patch_dim)
        self.w_ga = W_ga_full[:, :latent_ch].astype(jnp.bfloat16)        # (D, L)

        # g_s: latent -> patch pixels (feature order (C, Ph, Pw), matching g_a).
        self.w_gs = init(ks[1], (latent_ch, patch_dim),
                         latent_ch).astype(jnp.bfloat16)                  # (L, D)

        # FNP observation encoder consumes [coor(2), |coor|^2, 1, val(C)]; the
        # |coor|^2 and ones columns only exist for the RBF-as-matmul trick, so
        # their encoder rows are zero ("[coor, val] @ W1" semantics).
        we1c = init(ks[2], (2, hidden), 2 + in_ch)
        we1v = init(ks[3], (in_ch, hidden), 2 + in_ch)
        self.we1 = jnp.concatenate(
            [we1c, jnp.zeros((2, hidden), jnp.float32), we1v],
            axis=0).astype(jnp.bfloat16)                                  # (4+C, Hd)
        self.we2 = init(ks[4], (hidden, latent_ch), hidden).astype(jnp.bfloat16)

        # Decoder: background / residual weights stacked along K (one fused dot).
        wd1b = init(ks[5], (latent_ch, hidden), 2 * latent_ch)
        wd1r = init(ks[6], (latent_ch, hidden), 2 * latent_ch)
        self.wd1 = jnp.concatenate([wd1b, wd1r], axis=0).astype(jnp.bfloat16)  # (2L, Hd)
        self.wd2 = init(ks[7], (hidden, latent_ch), hidden).astype(jnp.bfloat16)

        # Packed biases (all zero-initialized, f32, one ref instead of six):
        # rows: [b_ga(L), be1(Hd), be2(L), bd1(Hd), bd2(L), b_gs(D)]
        self.biases = jnp.zeros((6, 128), jnp.float32)

        # Augmented latent-grid coordinates (normalized pixel centers) for the
        # RBF logits matmul: [gy/ls^2, gx/ls^2, -1/(2ls^2), -|g|^2/(2ls^2), 0...].
        gy = (jnp.arange(self.h, dtype=jnp.float32) + 0.5) / self.h
        gx = (jnp.arange(self.w, dtype=jnp.float32) + 0.5) / self.w
        yy, xx = jnp.meshgrid(gy, gx, indexing="ij")
        yy, xx = yy.ravel(), xx.ravel()
        inv_ls2 = 1.0 / (_LENGTHSCALE * _LENGTHSCALE)
        gcol = jnp.stack(
            [yy * inv_ls2, xx * inv_ls2,
             jnp.full((self.G,), -0.5 * inv_ls2, jnp.float32),
             -(yy * yy + xx * xx) * 0.5 * inv_ls2], axis=-1)              # (G, 4)
        self.grid_aug = jnp.concatenate(
            [gcol, jnp.zeros((self.G, in_ch), jnp.float32)], axis=-1)     # (G, 4+C)

    # -------------------------------------------------------------------------
    def _fused_call(self, patches, obs_aug):
        """patches: (B*G, D) bf16 patch features, obs_aug: (B, N, F) f32 -> (B*G, D) f32."""
        BG, D = patches.shape
        B, N, F = obs_aug.shape
        BB = min(self.batch_block, B)
        assert B % BB == 0, "batch must be divisible by the batch block"
        G, L, Hd = self.G, self.L, self.hidden

        def rep(shape):  # grid-constant weight/shared array: whole block every step
            # TODO(synk): pipeline_mode=pl.Buffered(1) here for v7x at production sizes.
            return pl.BlockSpec(shape, lambda b: tuple(0 for _ in shape))

        return pl.pallas_call(
            _latent_fnp_kernel,
            out_shape=jax.ShapeDtypeStruct((BG, D), jnp.float32),
            grid=(B // BB,),
            in_specs=[
                pl.BlockSpec((BB * G, D), lambda b: (b, 0)),     # patches (bf16)
                pl.BlockSpec((BB, N, F), lambda b: (b, 0, 0)),   # obs_aug (f32)
                rep((G, F)),                                     # grid_aug
                rep((D, L)),                                     # g_a (mean half)
                rep((F, Hd)), rep((Hd, L)),                      # obs encoder
                rep((2 * L, Hd)), rep((Hd, L)),                  # FNP decoder
                rep((L, D)),                                     # g_s
                rep((6, 128)),                                   # packed biases
            ],
            out_specs=pl.BlockSpec((BB * G, D), lambda b: (b, 0)),
            compiler_params=pltpu.CompilerParams(
                dimension_semantics=("parallel",),               # v7x: 2 TCs share B
                vmem_limit_bytes=32 * 1024 * 1024),
        )(patches, obs_aug, self.grid_aug,
          self.w_ga, self.we1, self.we2, self.wd1, self.wd2, self.w_gs,
          self.biases)

    # -------------------------------------------------------------------------
    def __call__(self, obs_coor, obs_value, bkg, logger=None):
        del logger
        B, C, H, W = bkg.shape
        P, h, w = self.P, self.h, self.w

        # Patchify (B,C,H,W) -> (B*G, C*P*P), feature order (C, Ph, Pw); cast the
        # matmul operand to bf16 here (halves its HBM traffic into the kernel).
        # TODO(synk): at production H/W fold this rearrange into the BlockSpec
        #   index_map instead of an XLA transpose pass.
        patches = (bkg.reshape(B, C, h, P, w, P)
                      .transpose(0, 2, 4, 1, 3, 5)
                      .reshape(B * self.G, C * P * P)).astype(jnp.bfloat16)

        # Observation features [coor, |coor|^2, 1, val]; the |coor|^2 and ones
        # columns feed the RBF logits matmul (exact -||g-c||^2/(2ls^2) logits).
        obs_coor = obs_coor.astype(jnp.float32)
        c2 = jnp.sum(obs_coor * obs_coor, axis=-1, keepdims=True)
        obs_aug = jnp.concatenate(
            [obs_coor, c2, jnp.ones_like(c2), obs_value.astype(jnp.float32)],
            axis=-1)                                                      # (B, N, F)

        pix = self._fused_call(patches, obs_aug)                          # (B*G, D)

        # Un-patchify with the SAME (C, Ph, Pw) feature order as the encoder.
        x_hat = (pix.reshape(B, h, w, C, P, P)
                    .transpose(0, 3, 1, 4, 2, 5)
                    .reshape(B, C, H, W))
        return x_hat


# -----------------------------------------------------------------------------
if __name__ == "__main__":
    key = jax.random.PRNGKey(0)
    k_model, k_bkg, k_coor, k_val = jax.random.split(key, 4)

    # batch_block=2 keeps the grid at 2 steps so v7x's two TensorCores both work.
    B, C, H, W, N_OBS = 4, 4, 16, 16, 8
    model = LatentFNPPallas(k_model, in_ch=C, H=H, W=W, patch=4, latent_ch=8,
                            n_obs=N_OBS, hidden=32, batch_block=2)

    bkg = jax.random.normal(k_bkg, (B, C, H, W), jnp.float32)
    obs_coor = jax.random.uniform(k_coor, (B, N_OBS, 2), jnp.float32)   # in [0,1]^2
    obs_value = jax.random.normal(k_val, (B, N_OBS, C), jnp.float32)

    fwd = jax.jit(lambda oc, ov, bg: model(oc, ov, bg))
    ana_mean = fwd(obs_coor, obs_value, bkg)
    jax.block_until_ready(ana_mean)
    assert ana_mean.shape == (B, C, H, W) and ana_mean.dtype == jnp.float32
    assert bool(jnp.all(jnp.isfinite(ana_mean)))
    print("KERNEL_OK")
</pallas_src>

<mosaic_0001>
module attributes {stable_mosaic.version = 11 : i64} {
  func.func @_latent_fnp_kernel(%arg0: i32, %arg1: memref<32x64xbf16, #tpu.memory_space<vmem>>, %arg2: memref<2x8x8xf32, #tpu.memory_space<vmem>>, %arg3: memref<16x8xf32, #tpu.memory_space<vmem>>, %arg4: memref<64x8xbf16, #tpu.memory_space<vmem>>, %arg5: memref<8x32xbf16, #tpu.memory_space<vmem>>, %arg6: memref<32x8xbf16, #tpu.memory_space<vmem>>, %arg7: memref<16x32xbf16, #tpu.memory_space<vmem>>, %arg8: memref<32x8xbf16, #tpu.memory_space<vmem>>, %arg9: memref<8x64xbf16, #tpu.memory_space<vmem>>, %arg10: memref<6x128xf32, #tpu.memory_space<vmem>>, %arg11: memref<32x64xf32, #tpu.memory_space<vmem>>) attributes {dimension_semantics = [#tpu.dimension_semantics<parallel>], iteration_bounds = array<i64: 2>, scalar_prefetch = 0 : i64, scratch_operands = 0 : i64, tpu.core_type = #tpu.core_type<tc>, window_params = [{transform_indices = @transform_0, window_bounds = array<i64: 32, 64>}, {transform_indices = @transform_1, window_bounds = array<i64: 2, 8, 8>}, {pipeline_mode = #tpu.pipeline_mode<synchronous>, transform_indices = @transform_2, window_bounds = array<i64: 16, 8>}, {pipeline_mode = #tpu.pipeline_mode<synchronous>, transform_indices = @transform_3, window_bounds = array<i64: 64, 8>}, {pipeline_mode = #tpu.pipeline_mode<synchronous>, transform_indices = @transform_4, window_bounds = array<i64: 8, 32>}, {pipeline_mode = #tpu.pipeline_mode<synchronous>, transform_indices = @transform_5, window_bounds = array<i64: 32, 8>}, {pipeline_mode = #tpu.pipeline_mode<synchronous>, transform_indices = @transform_6, window_bounds = array<i64: 16, 32>}, {pipeline_mode = #tpu.pipeline_mode<synchronous>, transform_indices = @transform_7, window_bounds = array<i64: 32, 8>}, {pipeline_mode = #tpu.pipeline_mode<synchronous>, transform_indices = @transform_8, window_bounds = array<i64: 8, 64>}, {pipeline_mode = #tpu.pipeline_mode<synchronous>, transform_indices = @transform_9, window_bounds = array<i64: 6, 128>}, {transform_indices = @transform_10, window_bounds = array<i64: 32, 64>}]} {
    %c0 = arith.constant 0 : index
    %c0_0 = arith.constant 0 : index
    %0 = vector.load %arg10[%c0, %c0_0] : memref<6x128xf32, #tpu.memory_space<vmem>>, vector<6x128xf32>
    %1 = vector.extract_strided_slice %0 {offsets = [0, 0], sizes = [1, 8], strides = [1, 1]} : vector<6x128xf32> to vector<1x8xf32>
    %2 = vector.extract_strided_slice %0 {offsets = [1, 0], sizes = [1, 32], strides = [1, 1]} : vector<6x128xf32> to vector<1x32xf32>
    %3 = vector.extract_strided_slice %0 {offsets = [2, 0], sizes = [1, 8], strides = [1, 1]} : vector<6x128xf32> to vector<1x8xf32>
    %4 = vector.extract_strided_slice %0 {offsets = [3, 0], sizes = [1, 32], strides = [1, 1]} : vector<6x128xf32> to vector<1x32xf32>
    %5 = vector.extract_strided_slice %0 {offsets = [4, 0], sizes = [1, 8], strides = [1, 1]} : vector<6x128xf32> to vector<1x8xf32>
    %6 = vector.extract_strided_slice %0 {offsets = [5, 0], sizes = [1, 64], strides = [1, 1]} : vector<6x128xf32> to vector<1x64xf32>
    %c0_1 = arith.constant 0 : index
    %c0_2 = arith.constant 0 : index
    %7 = vector.load %arg1[%c0_1, %c0_2] : memref<32x64xbf16, #tpu.memory_space<vmem>>, vector<32x64xbf16>
    %c0_3 = arith.constant 0 : index
    %c0_4 = arith.constant 0 : index
    %8 = vector.load %arg4[%c0_3, %c0_4] : memref<64x8xbf16, #tpu.memory_space<vmem>>, vector<64x8xbf16>
    %cst = arith.constant dense<0.000000e+00> : vector<32x8xf32>
    %9 = tpu.matmul %7, %8, %cst {dimension_numbers = #tpu.dot_dimension_numbers<[1], [0], [0], [1], [0, 0, 1, 1], [], []>} : vector<32x64xbf16>, vector<64x8xbf16>, vector<32x8xf32> -> vector<32x8xf32>
    %10 = vector.broadcast %1 : vector<1x8xf32> to vector<32x8xf32>
    %11 = arith.addf %9, %10 : vector<32x8xf32>
    %c0_5 = arith.constant 0 : index
    %c0_6 = arith.constant 0 : index
    %c0_7 = arith.constant 0 : index
    %12 = vector.load %arg2[%c0_5, %c0_6, %c0_7] : memref<2x8x8xf32, #tpu.memory_space<vmem>>, vector<2x8x8xf32>
    %13 = vector.shape_cast %12 : vector<2x8x8xf32> to vector<16x8xf32>
    %14 = arith.truncf %13 : vector<16x8xf32> to vector<16x8xbf16>
    %c0_8 = arith.constant 0 : index
    %c0_9 = arith.constant 0 : index
    %15 = vector.load %arg5[%c0_8, %c0_9] : memref<8x32xbf16, #tpu.memory_space<vmem>>, vector<8x32xbf16>
    %cst_10 = arith.constant dense<0.000000e+00> : vector<16x32xf32>
    %16 = tpu.matmul %14, %15, %cst_10 {dimension_numbers = #tpu.dot_dimension_numbers<[1], [0], [0], [1], [0, 0, 1, 1], [], []>} : vector<16x8xbf16>, vector<8x32xbf16>, vector<16x32xf32> -> vector<16x32xf32>
    %17 = vector.broadcast %2 : vector<1x32xf32> to vector<16x32xf32>
    %18 = arith.addf %16, %17 : vector<16x32xf32>
    %cst_11 = arith.constant 0.000000e+00 : f32
    %19 = vector.broadcast %cst_11 : f32 to vector<16x32xf32>
    %20 = arith.maximumf %18, %19 : vector<16x32xf32>
    %21 = arith.truncf %20 : vector<16x32xf32> to vector<16x32xbf16>
    %c0_12 = arith.constant 0 : index
    %c0_13 = arith.constant 0 : index
    %22 = vector.load %arg6[%c0_12, %c0_13] : memref<32x8xbf16, #tpu.memory_space<vmem>>, vector<32x8xbf16>
    %cst_14 = arith.constant dense<0.000000e+00> : vector<16x8xf32>
    %23 = tpu.matmul %21, %22, %cst_14 {dimension_numbers = #tpu.dot_dimension_numbers<[1], [0], [0], [1], [0, 0, 1, 1], [], []>} : vector<16x32xbf16>, vector<32x8xbf16>, vector<16x8xf32> -> vector<16x8xf32>
    %24 = vector.broadcast %3 : vector<1x8xf32> to vector<16x8xf32>
    %25 = arith.addf %23, %24 : vector<16x8xf32>
    %26 = vector.shape_cast %25 : vector<16x8xf32> to vector<2x8x8xf32>
    %c0_15 = arith.constant 0 : index
    %c0_16 = arith.constant 0 : index
    %27 = vector.load %arg3[%c0_15, %c0_16] : memref<16x8xf32, #tpu.memory_space<vmem>>, vector<16x8xf32>
    %cst_17 = arith.constant dense<0.000000e+00> : vector<16x16xf32>
    %28 = tpu.matmul %13, %27, %cst_17 {dimension_numbers = #tpu.dot_dimension_numbers<[1], [1], [0], [0], [0, 0, 1, 0], [], []>} : vector<16x8xf32>, vector<16x8xf32>, vector<16x16xf32> -> vector<16x16xf32>
    %29 = math.exp %28 : vector<16x16xf32>
    %30 = vector.shape_cast %29 : vector<16x16xf32> to vector<2x8x16xf32>
    %cst_18 = arith.constant dense<0.000000e+00> : vector<2x16xf32>
    %31 = vector.multi_reduction <add>, %30, %cst_18 [1] : vector<2x8x16xf32> to vector<2x16xf32>
    %32 = vector.shape_cast %31 : vector<2x16xf32> to vector<2x1x16xf32>
    %33 = tpu.reciprocal %32 {approx = true} : vector<2x1x16xf32> -> vector<2x1x16xf32>
    %34 = vector.broadcast %33 : vector<2x1x16xf32> to vector<2x8x16xf32>
    %35 = arith.mulf %30, %34 : vector<2x8x16xf32>
    %36 = arith.truncf %35 : vector<2x8x16xf32> to vector<2x8x16xbf16>
    %37 = arith.truncf %26 : vector<2x8x8xf32> to vector<2x8x8xbf16>
    %cst_19 = arith.constant dense<0.000000e+00> : vector<2x16x8xf32>
    %38 = tpu.matmul %36, %37, %cst_19 {dimension_numbers = #tpu.dot_dimension_numbers<[1], [1], [2], [2], [0, 0, 0, 2, 1, 2], [0], [0]>} : vector<2x8x16xbf16>, vector<2x8x8xbf16>, vector<2x16x8xf32> -> vector<2x16x8xf32>
    %39 = vector.shape_cast %38 : vector<2x16x8xf32> to vector<32x8xf32>
    %40 = tpu.concatenate %11, %39 in 1 : vector<32x8xf32>, vector<32x8xf32> -> vector<32x16xf32>
    %41 = arith.truncf %40 : vector<32x16xf32> to vector<32x16xbf16>
    %c0_20 = arith.constant 0 : index
    %c0_21 = arith.constant 0 : index
    %42 = vector.load %arg7[%c0_20, %c0_21] : memref<16x32xbf16, #tpu.memory_space<vmem>>, vector<16x32xbf16>
    %cst_22 = arith.constant dense<0.000000e+00> : vector<32x32xf32>
    %43 = tpu.matmul %41, %42, %cst_22 {dimension_numbers = #tpu.dot_dimension_numbers<[1], [0], [0], [1], [0, 0, 1, 1], [], []>} : vector<32x16xbf16>, vector<16x32xbf16>, vector<32x32xf32> -> vector<32x32xf32>
    %44 = vector.broadcast %4 : vector<1x32xf32> to vector<32x32xf32>
    %45 = arith.addf %43, %44 : vector<32x32xf32>
    %cst_23 = arith.constant 0.000000e+00 : f32
    %46 = vector.broadcast %cst_23 : f32 to vector<32x32xf32>
    %47 = arith.maximumf %45, %46 : vector<32x32xf32>
    %48 = arith.truncf %47 : vector<32x32xf32> to vector<32x32xbf16>
    %c0_24 = arith.constant 0 : index
    %c0_25 = arith.constant 0 : index
    %49 = vector.load %arg8[%c0_24, %c0_25] : memref<32x8xbf16, #tpu.memory_space<vmem>>, vector<32x8xbf16>
    %cst_26 = arith.constant dense<0.000000e+00> : vector<32x8xf32>
    %50 = tpu.matmul %48, %49, %cst_26 {dimension_numbers = #tpu.dot_dimension_numbers<[1], [0], [0], [1], [0, 0, 1, 1], [], []>} : vector<32x32xbf16>, vector<32x8xbf16>, vector<32x8xf32> -> vector<32x8xf32>
    %51 = arith.addf %11, %50 : vector<32x8xf32>
    %52 = vector.broadcast %5 : vector<1x8xf32> to vector<32x8xf32>
    %53 = arith.addf %51, %52 : vector<32x8xf32>
    %54 = arith.truncf %53 : vector<32x8xf32> to vector<32x8xbf16>
    %c0_27 = arith.constant 0 : index
    %c0_28 = arith.constant 0 : index
    %55 = vector.load %arg9[%c0_27, %c0_28] : memref<8x64xbf16, #tpu.memory_space<vmem>>, vector<8x64xbf16>
    %cst_29 = arith.constant dense<0.000000e+00> : vector<32x64xf32>
    %56 = tpu.matmul %54, %55, %cst_29 {dimension_numbers = #tpu.dot_dimension_numbers<[1], [0], [0], [1], [0, 0, 1, 1], [], []>} : vector<32x8xbf16>, vector<8x64xbf16>, vector<32x64xf32> -> vector<32x64xf32>
    %57 = vector.broadcast %6 : vector<1x64xf32> to vector<32x64xf32>
    %58 = arith.addf %56, %57 : vector<32x64xf32>
    %c0_30 = arith.constant 0 : index
    %c0_31 = arith.constant 0 : index
    %59 = vector.load %arg11[%c0_30, %c0_31] : memref<32x64xf32, #tpu.memory_space<vmem>>, vector<32x64xf32>
    tpu.vector_store %arg11[%c0_30, %c0_31], %58 {strides = array<i32>} : memref<32x64xf32, #tpu.memory_space<vmem>>, vector<32x64xf32>,
    return
  }
  func.func @transform_0(%arg0: i32) -> (i32, i32) {
    %c0_i32 = arith.constant 0 : i32
    %c0_i32_0 = arith.constant 0 : i32
    return %arg0, %c0_i32 : i32, i32
  }
  func.func @transform_1(%arg0: i32) -> (i32, i32, i32) {
    %c0_i32 = arith.constant 0 : i32
    %c0_i32_0 = arith.constant 0 : i32
    %c0_i32_1 = arith.constant 0 : i32
    return %arg0, %c0_i32, %c0_i32_0 : i32, i32, i32
  }
  func.func @transform_2(%arg0: i32) -> (i32, i32) {
    %c0_i32 = arith.constant 0 : i32
    %c0_i32_0 = arith.constant 0 : i32
    %c0_i32_1 = arith.constant 0 : i32
    return %c0_i32, %c0_i32_0 : i32, i32
  }
  func.func @transform_3(%arg0: i32) -> (i32, i32) {
    %c0_i32 = arith.constant 0 : i32
    %c0_i32_0 = arith.constant 0 : i32
    %c0_i32_1 = arith.constant 0 : i32
    return %c0_i32, %c0_i32_0 : i32, i32
  }
  func.func @transform_4(%arg0: i32) -> (i32, i32) {
    %c0_i32 = arith.constant 0 : i32
    %c0_i32_0 = arith.constant 0 : i32
    %c0_i32_1 = arith.constant 0 : i32
    return %c0_i32, %c0_i32_0 : i32, i32
  }
  func.func @transform_5(%arg0: i32) -> (i32, i32) {
    %c0_i32 = arith.constant 0 : i32
    %c0_i32_0 = arith.constant 0 : i32
    %c0_i32_1 = arith.constant 0 : i32
    return %c0_i32, %c0_i32_0 : i32, i32
  }
  func.func @transform_6(%arg0: i32) -> (i32, i32) {
    %c0_i32 = arith.constant 0 : i32
    %c0_i32_0 = arith.constant 0 : i32
    %c0_i32_1 = arith.constant 0 : i32
    return %c0_i32, %c0_i32_0 : i32, i32
  }
  func.func @transform_7(%arg0: i32) -> (i32, i32) {
    %c0_i32 = arith.constant 0 : i32
    %c0_i32_0 = arith.constant 0 : i32
    %c0_i32_1 = arith.constant 0 : i32
    return %c0_i32, %c0_i32_0 : i32, i32
  }
  func.func @transform_8(%arg0: i32) -> (i32, i32) {
    %c0_i32 = arith.constant 0 : i32
    %c0_i32_0 = arith.constant 0 : i32
    %c0_i32_1 = arith.constant 0 : i32
    return %c0_i32, %c0_i32_0 : i32, i32
  }
  func.func @transform_9(%arg0: i32) -> (i32, i32) {
    %c0_i32 = arith.constant 0 : i32
    %c0_i32_0 = arith.constant 0 : i32
    %c0_i32_1 = arith.constant 0 : i32
    return %c0_i32, %c0_i32_0 : i32, i32
  }
  func.func @transform_10(%arg0: i32) -> (i32, i32) {
    %c0_i32 = arith.constant 0 : i32
    %c0_i32_0 = arith.constant 0 : i32
    return %arg0, %c0_i32 : i32, i32
  }
}

</mosaic_0001>

<bundles_post_ra>
// kernel: _lambda_.1
= control target key start
LH: loop header
LB: loop body
LE: loop exit
PB: predicated region body
PF: predicated region fallthrough
CT: control target
= control target key end

     0   :  { %s1423_s13 = smov 0   ;;  %s1561_s0 = inlined_call_operand.vmem [shape: bf16[64,64], index: 0, kind: input, shape index: {}]   ;;  %s1562_s1 = inlined_call_operand.vmem [shape: f32[4,8,8], index: 1, kind: input, shape index: {}]   ;;  %s1563_s2 = inlined_call_operand.vmem [shape: f32[16,8], index: 2, kind: input, shape index: {}]   ;;  %s1564_s3 = inlined_call_operand.vmem [shape: bf16[64,8], index: 3, kind: input, shape index: {}]   ;;  %s1565_s4 = inlined_call_operand.vmem [shape: bf16[8,32], index: 4, kind: input, shape index: {}]   ;;  %s1566_s5 = inlined_call_operand.vmem [shape: bf16[32,8], index: 5, kind: input, shape index: {}]   ;;  %s1567_s6 = inlined_call_operand.vmem [shape: bf16[16,32], index: 6, kind: input, shape index: {}]   ;;  %s1568_s7 = inlined_call_operand.vmem [shape: bf16[32,8], index: 7, kind: input, shape index: {}]   ;;  %s1569_s8 = inlined_call_operand.vmem [shape: bf16[8,64], index: 8, kind: input, shape index: {}]   ;;  %s1570_s9 = inlined_call_operand.vmem [shape: f32[6,128], index: 9, kind: input, shape index: {}]   ;;  %s1571_s10 = inlined_call_operand.vmem [shape: f32[64,64], index: 10, kind: output, shape index: {}]  }
   0x1 LB: > { %s1175_s14 = sadd.s32 4294967295, %s1363_s13   ;;  %p1179_p0 = scmp.ge.s32.totalorder %s1363_s13, 1  ;;  %s1363_s13 = sphi %s1423_s13, %s20_s13  }
   0x2   : > { %p324_p1 = scmp.lt.s32.totalorder %s1363_s13, 3 }
   0x4   : > { %p325_p2 = pnand %p1179_p0, %p324_p1 }
   0x5   : > { %v496_v0 = vld [vmem:[%s1565_s4] sm:$0xf] (!%p325_p2)  ;;  %vm505_vm0 = vcmask (!%p325_p2), 1043456   ;;  %s1182_s17 = sshll.u32 (!%p325_p2), %s1175_s14, 1  ;;  %v1365_v1 = vmov (!%p325_p2), 0.0   ;;  %vm1366_vm1 = vmmov (!%p325_p2), 0   ;;  %v399_v15 = vlaneseq (!%p325_p2) }
   0x6   : > { %328 = sbr.rel (%p325_p2) target bundleno = 1606 (0x646), region = 60  ;;  %1256 = vmatprep.subr.bf16.mxu1 (!%p325_p2), %v1365_v1  ;;  %v507_v2 = vsel (!%p325_p2), %vm505_vm0, %v496_v0, 0  ;;  %1258 = vmatprep.mubr.msk.bf16.mxu1 (!%p325_p2), %vm1366_vm1, %v1365_v1  ;;  %p374_p3 = scmp.lt.s32.totalorder (!%p325_p2), %s1182_s17, 3  ;;  %v1338_v3 = vld [vmem:[%s1566_s5] sm:$0xff] (!%p325_p2)   ;;  %vm501_vm2 = vcmask (!%p325_p2), 64512   ;;  %v1339_v7 = vld [vmem:[%s1566_s5 + $0x8] sm:$0xff] (!%p325_p2)  }
   0x7   : > { %1257 = vmatpush3.bf16.msra.mxu1 (!%p325_p2), %v507_v2  ;;  %v618_v8 = vld [vmem:[%s1563_s2] sm:$0xff] (!%p325_p2)  ;;  %v619_v9 = vld [vmem:[%s1563_s2 + $0x8] sm:$0xff] (!%p325_p2)  ;;  %vm1462_vm3 = vmpackc.low (!%p325_p2), %vm501_vm2, %vm501_vm2  ;;  %v1477_v16 = vshrl.u32 (!%p325_p2), %v399_v15, 7  ;;  %vm573_vm4 = vcmask (!%p325_p2), 261120   ;;  %s1180_s20 = sshll.u32 (!%p325_p2), %s1175_s14, 2  ;;  %vm437_vm5 = vcmask (!%p325_p2), 523264  }
   0x8   : > { %1262 = vmatprep.subr.bf16.mxu1 (!%p325_p2), %v1365_v1  ;;  %v1309_v10 = vpack.c.bf16 (!%p325_p2), %v619_v9, %v618_v8  ;;  %v1340_v12 = vld [vmem:[%s1564_s3] sm:$0xff] (!%p325_p2)   ;;  %v1341_v13 = vld [vmem:[%s1564_s3 + $0x8] sm:$0xff] (!%p325_p2)   ;;  %v1342_v14 = vld [vmem:[%s1564_s3 + $0x10] sm:$0xff] (!%p325_p2)   ;;  %p368_p4 = scmp.lt.s32.totalorder (!%p325_p2), %s1180_s20, 7  ;;  %vm711_vm6 = vcmask (!%p325_p2), 130048   ;;  %s1367_s28 = smov (!%p325_p2), 8  }
   0x9   : > { %1244 = vmatprep.subr.bf16.mxu0 (!%p325_p2), %v1340_v12  ;;  %v499_v17 = vsub.s32 (!%p325_p2), 1, %v1477_v16  ;;  %v1483_v18 = vld [vmem:[%s1570_s9] sm:$0x3f] (!%p325_p2)  ;;  %v1343_v29 = vld [vmem:[%s1564_s3 + $0x18] sm:$0xff] (!%p325_p2)   ;;  %v559_v32 = vsub.s32 (!%p325_p2), 2, %v1477_v16 }
   0xa   : > { %1245 = vmatpush3.bf16.msra.mxu0 (!%p325_p2), %v1340_v12  ;;  %v1346_v12 = vld [vmem:[%s1567_s6] sm:$0xff] (!%p325_p2)  }
   0xb   : > { %1246 = vmatprep.subr.bf16.mxu0 (!%p325_p2), %v1341_v13  ;;  %v500_v19 = vrot.slane (!%p325_p2), %v1483_v18, %v499_v17  ;;  %v560_v33 = vrot.slane (!%p325_p2), %v1483_v18, %v559_v32 }
   0xd   : > { %s1575_s17 = smov (!%p374_p3, %s1182_s17), 3  ;;  %s1577_s20 = smov (!%p368_p4, %s1180_s20), 7 }
   0xe   : > { %s1183_s18 = sshll.u32 %s1575_s17, 3  ;;  %1247 = vmatpush3.bf16.msra.mxu0 %v1341_v13  ;;  %s1185_s17 = sshll.u32 %s1577_s20, 3 }
   0xf   : > { %s377_s23 = scalar_lea.vmem %s1562_s1, %s1183_s18  ;;  %1248 = vmatprep.subr.bf16.mxu0 %v1342_v14  ;;  %s383_s21 = scalar_lea.vmem %s1571_s10, %s1185_s17 }
  0x10   : > { %v493_v4 = vld [vmem:[%s377_s23] sm:$0xff]  ;;  %v494_v5 = vld [vmem:[%s377_s23 + $0x8] sm:$0xff]  ;;  %s1181_s23 = sshll.u32 %s1577_s20, 2 }
  0x11   : > { %v495_v6 = vpack.c.bf16 %v494_v5, %v493_v4  ;;  %s371_s26 = scalar_lea.vmem %s1561_s0, %s1181_s23 }
  0x12   : > { %1249 = vmatpush3.bf16.msra.mxu0 %v1342_v14  ;;  %v1344_v30 = vld [vmem:[%s371_s26] sm:$0xff]   ;;  %v1345_v31 = vld [vmem:[%s371_s26 + $0x8] sm:$0xff]  }
  0x13   : > { %1259 = vmatmul.mubr.msk.bf16.vlgmr.msra.gmra.mrb[0].mxu1 %vm501_vm2, %v495_v6  ;;  %1250 = vmatprep.subr.bf16.mxu0 %v1343_v29 }
  0x14   : > { %1263 = vmatpush3.bf16.msra.mxu1 %v1338_v3  ;;  %1266 = vmatprep.mubr.msk.bf16.mxu1 %vm1366_vm1, %v1365_v1 }
  0x15   : > { %1264 = vmatprep.subr.bf16.mxu1 %v1365_v1  ;;  %1252 = vmatprep.mubr.msk.bf16.mxu0 %vm437_vm5, %v1344_v30 }
  0x16   : > { %1251 = vmatpush3.bf16.msra.mxu0 %v1343_v29 }
  0x17   : > { %1277 = vmatprep.subr.bf16.mxu0 %v1365_v1 }
  0x18   : > { %1265 = vmatpush3.bf16.msra.mxu1 %v1339_v7 }
  0x19   : > { %1311 = vmatprep.subr.msk.bf16.mxu1 %vm1462_vm3, %v1309_v10  ;;  %1253 = vmatmul.mubr.msk.bf16.vlgmr.msra.gmra.mrb[0].mxu0 %vm437_vm5, %v1345_v31 }
  0x1a   : > { %1279 = vmatprep.mubr.msk.bf16.mxu0 %vm1366_vm1, %v1365_v1 }
  0xe6   : > { %v543_v20 = vpop.f32.mrb[0].mxu1 }
  0xe7   : > { %v544_v21 = vadd.f32 %v543_v20, %v500_v19  ;;  %v1260_v22 = vpop.f32.mrb[1].mxu1 }
  0xe8   : > { %v546_v23 = vpop.f32.mrb[2].mxu1 }
  0xe9   : > { %v547_v24 = vadd.f32 %v546_v23, %v500_v19  ;;  %v1261_v25 = vpop.f32.mrb[3].mxu1  ;;  %v550_v26 = vmax.f32 %v544_v21, 0.0 }
  0xea   : > { %v401_v25 = vsub.s32 0, %v1477_v16 }
  0xeb   : > { %v551_v27 = vmax.f32 %v547_v24, 0.0 }
  0xec   : > { %v1254_v6 = vpop.f32.mrb[0].mxu0 }
  0xed   : > { %v552_v28 = vpack.c.bf16 %v551_v27, %v550_v26  ;;  %v478_v7 = vpop.f32.mrb[1].mxu0  ;;  %v402_v26 = vrot.slane %v1483_v18, %v401_v25 }
  0xee   : > { %v1255_v8 = vpop.f32.mrb[2].mxu0 }
  0xef   : > { %1267 = vmatmul.mubr.msk.bf16.vlgmr.msra.gmra.mrb[4].mxu1 %vm573_vm4, %v552_v28  ;;  %v481_v9 = vpop.f32.mrb[3].mxu0  ;;  %v479_v28 = vadd.f32 %v478_v7, %v402_v26 }
  0xf0   : > { %1314 = vmatpush3.bf16.xpose.msk.msra.mxu1 %vm1462_vm3, %v1309_v10  ;;  %1274 = vmatprep.mubr.msk.f32.mxu1 %vm501_vm2, %v493_v4  ;;  %v482_v29 = vadd.f32 %v481_v9, %v402_v26 }
  0xf1   : > { %1283 = vmatprep.subr.bf16.mxu1 %v1365_v1 }
  0xf7   : > { %1275 = vmatmul.mubr.msk.f32.vlgmr.msra.gmra.mrb[8].mxu1 %vm501_vm2, %v494_v5 }
  0xf8   : > { %1285 = vmatprep.mubr.msk.bf16.mxu1 %vm1366_vm1, %v1365_v1 }
 0x1c2   : > { %v611_v34 = vpop.f32.mrb[4].mxu1 }
 0x1c3   : > { %v612_v35 = vadd.f32 %v611_v34, %v560_v33  ;;  %v1268_v36 = vpop.f32.mrb[5].mxu1 }
 0x1c4   : > { %v614_v37 = vpop.f32.mrb[6].mxu1  ;;  %v487_v36 = vadd.f32 %v1254_v6, %v402_v26 }
 0x1c5   : > { %v732_v38 = vpack.c.bf16 %v612_v35, %v612_v35  ;;  %v615_v39 = vadd.f32 %v614_v37, %v560_v33  ;;  %v1269_v40 = vpop.f32.mrb[7].mxu1  ;;  %v490_v37 = vadd.f32 %v1255_v8, %v402_v26 }
 0x1c7   : > { %v754_v41 = vsel %vm505_vm0, %v732_v38, 0  ;;  %v733_v42 = vpack.c.bf16 %v615_v39, %v615_v39 }
 0x1c8   : > { %1278 = vmatpush3.bf16.msra.mxu0 %v754_v41 }
 0x1c9   : > { %v817_v43 = vsel %vm505_vm0, %v733_v42, 0  ;;  %1289 = vmatprep.subr.bf16.mxu0 %v1346_v12 }
 0x1ca   : > { %v1276_v44 = vpop.f32.mrb[8].mxu1  ;;  %1284 = vmatpush3.bf16.msra.mxu1 %v817_v43  ;;  %v1347_v43 = vld [vmem:[%s1568_s7] sm:$0xff]  }
 0x1cb   : > { %v709_v45 = vmul.f32 1.442695, %v1276_v44  ;;  %v698_v46 = vpop.f32.mrb[9].mxu1  ;;  %1295 = vmatprep.subr.bf16.mxu1 %v1347_v43  ;;  %v1348_v44 = vld [vmem:[%s1568_s7 + $0x8] sm:$0xff]  }
 0x1cc   : > { %v707_v47 = vmul.f32 1.442695, %v698_v46 }
 0x1cd   : > { %1349 = vpow2.f32 %v709_v45  ;;  %v886_v45 = vsub.s32 3, %v1477_v16 }
 0x1ce   : > { %1351 = vpow2.f32 %v707_v47 }
 0x1cf   : > { %v887_v46 = vrot.slane %v1483_v18, %v886_v45 }
 0x1d7   : > { %v1350_v48 = vpop.eup %1349 }
 0x1d8   : > { %v1352_v49 = vpop.eup %1351  ;;  %v719_v50 = vsel %vm711_vm6, %v1350_v48, 0.0 }
 0x1d9   : > { %v720_v51 = vrot.slane %v719_v50, 4  ;;  %v712_v52 = vsel %vm711_vm6, %v1352_v49, 0.0 }
 0x1da   : > { %v713_v53 = vrot.slane %v712_v52, 4 }
 0x1db   : > { %v721_v54 = vadd.f32 %v720_v51, %v719_v50 }
 0x1dc   : > { %v714_v55 = vadd.f32 %v713_v53, %v712_v52 }
 0x1dd   : > { %v722_v56 = vrot.slane %v721_v54, 2 }
 0x1de   : > { %v715_v57 = vrot.slane %v714_v55, 2 }
 0x1df   : > { %v723_v58 = vadd.f32 %v722_v56, %v721_v54 }
 0x1e0   : > { %v716_v59 = vadd.f32 %v715_v57, %v714_v55 }
 0x1e1   : > { %v724_v60 = vrot.slane %v723_v58, 1 }
 0x1e2   : > { %v717_v61 = vrot.slane %v716_v59, 1 }
 0x1e3   : > { %v725_v62 = vadd.f32 %v724_v60, %v723_v58 }
 0x1e4   : > { %v718_v63 = vadd.f32 %v717_v61, %v716_v59  ;;  %v1040_v61 = vld [vmem:[%s1569_s8] sm:$0xf] }
 0x1e5   : > { %1353 = vrcp.f32 %v725_v62  ;;  %v1052_v62 = vsel %vm505_vm0, %v1040_v61, 0 }
 0x1e6   : > { %1355 = vrcp.f32 %v718_v63  ;;  %v1032_v63 = vsub.s32 4, %v1477_v16 }
 0x1ef   : > { %v1354_v0 = vpop.eup %1353 }
 0x1f0   : > { %v1356_v1 = vpop.eup %1355  ;;  %v729_v4 = vmul.f32 %v1354_v0, %v1350_v48 }
 0x1f1   : > { %v728_v2 = vmul.f32 %v1356_v1, %v1352_v49 }
 0x1f2   : > { %v731_v5 = vpack.c.bf16 %v729_v4, %v729_v4 }
 0x1f3   : > { %v730_v3 = vpack.c.bf16 %v728_v2, %v728_v2  ;;  %v1033_v2 = vrot.slane %v1483_v18, %v1032_v63 }
 0x1f5   : > { %734 = vxpose.xlu0.c.b16.start.end [1/1] (short) (narrow) %v730_v3, 16 }
 0x1f9   : > { %797 = vxpose.xlu0.c.b16.start.end [1/1] (short) (narrow) %v731_v5, 16 }
 0x25b   : > { %v742_v10 = vpop.trf.xlu0 }
 0x25c   : > { %1280 = vmatmul.mubr.msk.bf16.vlgmr.msra.gmra.mrb[4].mxu0 %vm501_vm2, %v742_v10 }
 0x25d   : > { %1290 = vmatpush3.bf16.msra.mxu0 %v1346_v12 }
 0x25e   : > { %1315 = vmatprep.subr.msk.bf16.mxu0 %vm505_vm0, %v1040_v61 }
 0x25f   : > { %v805_v11 = vpop.trf.xlu0 }
 0x260   : > { %1286 = vmatmul.mubr.msk.bf16.vlgmr.msra.gmra.mrb[12].mxu1 %vm501_vm2, %v805_v11 }
 0x261   : > { %1296 = vmatpush3.bf16.msra.mxu1 %v1347_v43 }
 0x262   : > { %1297 = vmatprep.subr.bf16.mxu1 %v1348_v44 }
 0x265   : > { %1298 = vmatpush3.bf16.msra.mxu1 %v1348_v44 }
 0x32f   : > { %v790_v13 = vpop.f32.mrb[4].mxu0 }
 0x330   : > { %v1281_v14 = vpop.f32.mrb[5].mxu0 }
 0x331   : > { %v793_v15 = vpop.f32.mrb[6].mxu0 }
 0x332   : > { %v1328_v17 = vpack.i.bf16 %v793_v15, %v790_v13  ;;  %v1282_v19 = vpop.f32.mrb[7].mxu0  ;;  %v1043_v15 = vsub.s32 5, %v1477_v16 }
 0x333   : > { %v853_v20 = vpop.f32.mrb[12].mxu1 }
 0x334   : > { %v1287_v21 = vpop.f32.mrb[13].mxu1  ;;  %1329 = vrot.lane.b32.xlu1 %v1328_v17, %s1367_s28  ;;  %v1044_v17 = vrot.slane %v1483_v18, %v1043_v15 }
 0x335   : > { %v856_v22 = vpop.f32.mrb[14].mxu1 }
 0x336   : > { %v1333_v23 = vpack.i.bf16 %v856_v22, %v853_v20  ;;  %v1288_v24 = vpop.f32.mrb[15].mxu1 }
 0x338   : > { %1334 = vrot.lane.b32.xlu1 %v1333_v23, %s1367_s28 }
 0x3a6   : > { %v1330_v27 = vpop.permute.xlu1 %1329 }
 0x3a7   : > { %v1332_v30 = vunpack.i.h.bf16 %v1330_v27  ;;  %v1331_v31 = vunpack.i.l.bf16 %v1330_v27 }
 0x3a9   : > { %v876_v32 = vsel %vm501_vm2, %v479_v28, %v1331_v31  ;;  %v877_v33 = vsel %vm501_vm2, %v482_v29, %v1332_v30 }
 0x3aa   : > { %v880_v34 = vpack.c.bf16 %v877_v33, %v876_v32  ;;  %v1335_v35 = vpop.permute.xlu1 %1334 }
 0x3ab   : > { %v1337_v38 = vunpack.i.h.bf16 %v1335_v35  ;;  %v1336_v39 = vunpack.i.l.bf16 %v1335_v35 }
 0x3ac   : > { %1291 = vmatprep.mubr.msk.bf16.mxu0 %vm711_vm6, %v880_v34 }
 0x3ad   : > { %v879_v40 = vsel %vm501_vm2, %v490_v37, %v1337_v38  ;;  %v878_v41 = vsel %vm501_vm2, %v487_v36, %v1336_v39 }
 0x3ae   : > { %v881_v42 = vpack.c.bf16 %v879_v40, %v878_v41 }
 0x3b0   : > { %1292 = vmatmul.mubr.msk.bf16.vlgmr.msra.gmra.mrb[8].mxu0 %vm711_vm6, %v881_v42 }
 0x3b1   : > { %1304 = vmatpush3.bf16.msra.mxu0 %v1052_v62 }
 0x483   : > { %v1293_v47 = vpop.f32.mrb[8].mxu0 }
 0x484   : > { %v943_v48 = vadd.f32 %v1293_v47, %v887_v46  ;;  %v934_v49 = vpop.f32.mrb[9].mxu0 }
 0x485   : > { %v935_v50 = vadd.f32 %v934_v49, %v887_v46  ;;  %v1294_v51 = vpop.f32.mrb[10].mxu0 }
 0x486   : > { %v946_v52 = vadd.f32 %v1294_v51, %v887_v46  ;;  %v937_v53 = vpop.f32.mrb[11].mxu0  ;;  %v951_v55 = vmax.f32 %v943_v48, 0.0 }
 0x487   : > { %v938_v54 = vadd.f32 %v937_v53, %v887_v46  ;;  %v949_v57 = vmax.f32 %v935_v50, 0.0 }
 0x488   : > { %v952_v56 = vmax.f32 %v946_v52, 0.0 }
 0x489   : > { %v950_v58 = vmax.f32 %v938_v54, 0.0 }
 0x48a   : > { %v954_v59 = vpack.c.bf16 %v952_v56, %v951_v55 }
 0x48b   : > { %v953_v60 = vpack.c.bf16 %v950_v58, %v949_v57 }
 0x48d   : > { %1299 = vmatprep.mubr.msk.bf16.mxu1 %vm573_vm4, %v953_v60 }
 0x48e   : > { %1300 = vmatmul.mubr.msk.bf16.vlgmr.msra.gmra.mrb[16].mxu1 %vm573_vm4, %v954_v59 }
 0x561   : > { %v1301_v0 = vpop.f32.mrb[16].mxu1 }
 0x562   : > { %v1028_v1 = vadd.f32 %v1301_v0, %v487_v36  ;;  %v1011_v3 = vpop.f32.mrb[17].mxu1 }
 0x563   : > { %v1026_v4 = vadd.f32 %v1011_v3, %v479_v28  ;;  %v1302_v5 = vpop.f32.mrb[18].mxu1 }
 0x564   : > { %v1029_v6 = vadd.f32 %v1302_v5, %v490_v37  ;;  %v1014_v7 = vpop.f32.mrb[19].mxu1  ;;  %v1036_v9 = vadd.f32 %v1033_v2, %v1028_v1 }
 0x565   : > { %v1027_v8 = vadd.f32 %v1014_v7, %v482_v29  ;;  %v1034_v11 = vadd.f32 %v1033_v2, %v1026_v4 }
 0x566   : > { %v1037_v10 = vadd.f32 %v1033_v2, %v1029_v6 }
 0x567   : > { %v1035_v12 = vadd.f32 %v1033_v2, %v1027_v8 }
 0x568   : > { %v1039_v13 = vpack.c.bf16 %v1037_v10, %v1036_v9 }
 0x569   : > { %v1038_v14 = vpack.c.bf16 %v1035_v12, %v1034_v11 }
 0x56b   : > { %1305 = vmatprep.mubr.msk.bf16.mxu0 %vm501_vm2, %v1038_v14 }
 0x56c   : > { %1306 = vmatmul.mubr.msk.bf16.vlgmr.msra.gmra.mrb[12].mxu0 %vm501_vm2, %v1039_v13 }
 0x63f   : > { %v1307_v19 = vpop.f32.mrb[12].mxu0 }
 0x640   : > { %v1088_v20 = vpop.f32.mrb[13].mxu0  ;;  %v1097_v25 = vadd.f32 %v1307_v19, %v1044_v17 }
 0x641   : > { %v1089_v21 = vadd.f32 %v1088_v20, %v1044_v17  ;;  %v1308_v22 = vpop.f32.mrb[14].mxu0 }
 0x642   : > { %v1091_v23 = vpop.f32.mrb[15].mxu0  ;;  %v1100_v26 = vadd.f32 %v1308_v22, %v1044_v17  ;;  %1105 = vst.msk [vmem:[%s383_s21 + $0x10] sm:$0xff] %vm437_vm5, %v1097_v25 }
 0x643   : > { %1103 = vst.msk [vmem:[%s383_s21] sm:$0xff] %vm437_vm5, %v1089_v21  ;;  %v1092_v24 = vadd.f32 %v1091_v23, %v1044_v17 }
 0x644   : > { %1106 = vst.msk [vmem:[%s383_s21 + $0x18] sm:$0xff] %vm437_vm5, %v1100_v26 }
 0x645   : > { %1104 = vst.msk [vmem:[%s383_s21 + $0x8] sm:$0xff] %vm437_vm5, %v1092_v24 }
 0x646 PF: > { %s20_s13 = sadd.s32 1, %s1363_s13  }
 0x647   : > { %p17_p5 = scmp.ge.s32.totalorder %s20_s13, 4  }
 0x649   :  { %19 = sbr.rel (!%p17_p5) target bundleno = 1 (0x1), region = 93 }

</bundles_post_ra>
